<compile_context>
chip_gen: v6e
topology: v6e:2x2x1
jax: 0.10.0
libtpu: 0.0.40
codegen_flags: <defaults>
</compile_context>

<pallas_src>
import functools

import jax
import jax.numpy as jnp
from jax.experimental import pallas as pl
from jax.experimental.pallas import tpu as pltpu


def _vmem_capacity_bytes():
    """Physical VMEM per TensorCore; conservative fallback if query fails."""
    try:
        return int(pltpu.get_tpu_info().vmem_capacity_bytes)
    except Exception:
        return 64 << 20  # v7x-sized conservative default


def _distill_kernel(logits_ref, labels_ref, teacher_ref, out_ref, acc_ref,
                    *, inv_T, c_ce, c_kl, n_rows):
    o = pl.program_id(0)           # outer ("parallel") row-chunk axis
    i = pl.program_id(1)           # inner ("arbitrary") reduction axis
    n_inner = pl.num_programs(1)

    @pl.when(i == 0)
    def _():
        acc_ref[...] = jnp.zeros(acc_ref.shape, acc_ref.dtype)

    rt, C = logits_ref.shape

    # Global row ids for this tile (the index_map clamps out-of-range tiles
    # to the last valid block; the mask below zeroes their contribution).
    tile_idx = o * n_inner + i
    row0 = tile_idx * rt
    row_ids = row0 + jax.lax.broadcasted_iota(jnp.int32, (rt, 1), 0)
    valid = row_ids < n_rows                                   # (rt, 1) bool

    # Zero out padded / duplicated rows before any math (keeps everything finite).
    s = jnp.where(valid, logits_ref[...].astype(jnp.float32), 0.0)
    t = jnp.where(valid, teacher_ref[...].astype(jnp.float32) * inv_T, 0.0)
    labels = labels_ref[...]                                   # (rt, 1) int32

    # Student log-softmax (numerically stable).
    s_max = jnp.max(s, axis=-1, keepdims=True)
    s_exp = jnp.exp(s - s_max)
    s_sum = jnp.sum(s_exp, axis=-1, keepdims=True)
    s_logp = (s - s_max) - jnp.log(s_sum)

    # Teacher log-softmax of teacher_logits / T; reuse exp(t_shift) for the
    # probabilities (no second full-tile exp) with an exact per-row reciprocal.
    t_max = jnp.max(t, axis=-1, keepdims=True)
    t_exp = jnp.exp(t - t_max)
    t_sum = jnp.sum(t_exp, axis=-1, keepdims=True)
    t_logp = (t - t_max) - jnp.log(t_sum)
    t_prob = t_exp * (1.0 / t_sum)

    # Cross-entropy: pick the label column via a lane iota compare.
    col = jax.lax.broadcasted_iota(jnp.int32, (rt, C), 1)
    ce_elem = jnp.where(col == labels, s_logp, 0.0)            # (rt, C)
    # KL(log_target=True): exp(t_lp) * (t_lp - s_lp)
    kl_elem = t_prob * (t_logp - s_logp)                       # (rt, C)

    # Fold the loss constants:  total = sum( c_kl*kl - c_ce*ce_picked )
    contrib = jnp.where(valid, c_kl * kl_elem - c_ce * ce_elem, 0.0)

    # Row-axis reduction only per step; cross-lane reduce deferred to epilogue.
    acc_ref[...] += jnp.sum(contrib, axis=0, keepdims=True)

    @pl.when(i == n_inner - 1)
    def _():
        total = jnp.sum(acc_ref[...])
        out_ref[...] = jnp.zeros(out_ref.shape, out_ref.dtype) + total


def distillation_loss(logits, labels, teacher_logits, *, T=1.0, a=0.25,
                      row_tile=None, outer_splits=2):
    """logits, teacher_logits: (B, S, C) (f32 or bf16); labels: (B, S) int."""
    B, S, C = logits.shape
    N = B * S

    # Keep input dtype as-is (bf16 inputs halve HBM traffic); flatten rows.
    logits2 = logits.reshape(N, C)
    teacher2 = teacher_logits.reshape(N, C)
    # TODO(synk): labels stay as a lane-sparse (rt, 1) int32 block; at large
    # row_tile the extra per-step descriptor cost is negligible.
    labels2 = labels.reshape(N, 1).astype(jnp.int32)

    # ---- per-generation VMEM-aware tile sizing --------------------------
    vmem_cap = _vmem_capacity_bytes()
    budget = vmem_cap // 2                            # tile-sizing budget
    vmem_limit = max(32 << 20, min(int(vmem_cap * 0.75), 128 << 20))

    in_bytes = (jnp.dtype(logits.dtype).itemsize
                + jnp.dtype(teacher_logits.dtype).itemsize)
    if row_tile is None:
        # double-buffered inputs + ~6 live f32 temps per element + labels
        per_row = C * (2 * in_bytes + 24) + 16
        rt = int(min(budget // max(per_row, 1), 2048))
    else:
        rt = int(row_tile)
    if rt >= N:
        rt = N                                        # single full block
    else:
        rt = max(8, (rt // 8) * 8)

    n_tiles = (N + rt - 1) // rt
    n_outer = max(1, min(int(outer_splits), n_tiles))  # 2-TC split on v7x
    n_inner = (n_tiles + n_outer - 1) // n_outer

    def _row_block(o, i):
        # Clamp so over-covered (o, i) pairs map to a valid block; the kernel's
        # row mask zeroes their contribution.
        return (jnp.minimum(o * n_inner + i, n_tiles - 1), 0)

    kernel = functools.partial(
        _distill_kernel,
        inv_T=1.0 / float(T),
        c_ce=float(a) / float(N),
        c_kl=(1.0 - float(a)) / float(B),
        n_rows=N,
    )

    out = pl.pallas_call(
        kernel,
        out_shape=jax.ShapeDtypeStruct((n_outer * 8, 128), jnp.float32),
        grid_spec=pltpu.PrefetchScalarGridSpec(
            num_scalar_prefetch=0,
            grid=(n_outer, n_inner),
            in_specs=[
                pl.BlockSpec((rt, C), _row_block),
                pl.BlockSpec((rt, 1), _row_block),
                pl.BlockSpec((rt, C), _row_block),
            ],
            out_specs=pl.BlockSpec((8, 128), lambda o, i: (o, 0)),
            scratch_shapes=[pltpu.VMEM((1, C), jnp.float32)],
        ),
        compiler_params=pltpu.CompilerParams(
            dimension_semantics=("parallel", "arbitrary"),
            vmem_limit_bytes=vmem_limit,
        ),
    )(logits2, labels2, teacher2)

    # One partial per outer chunk (each (8,128) block is filled with its value).
    return jnp.sum(out[::8, 0])


def _reference(logits, labels, teacher_logits, T=1.0, a=0.25):
    B = logits.shape[0]
    C = logits.shape[-1]
    s_lp = jax.nn.log_softmax(logits.astype(jnp.float32), axis=-1)
    t_lp = jax.nn.log_softmax(teacher_logits.astype(jnp.float32) / T, axis=-1)
    onehot = jax.nn.one_hot(labels, C, dtype=jnp.float32)
    first = -jnp.mean(jnp.sum(s_lp * onehot, axis=-1))
    second = jnp.sum(jnp.exp(t_lp) * (t_lp - s_lp)) / B
    return a * first + (1.0 - a) * second


if __name__ == "__main__":
    key = jax.random.PRNGKey(0)
    k1, k2, k3 = jax.random.split(key, 3)

    # --- f32 check, shapes divide evenly ---------------------------------
    B, S, C = 2, 8, 32
    logits = jax.random.normal(k1, (B, S, C), dtype=jnp.float32)
    teacher_logits = jax.random.normal(k2, (B, S, C), dtype=jnp.float32)
    labels = jax.random.randint(k3, (B, S), 0, C, dtype=jnp.int32)

    loss = jax.block_until_ready(
        distillation_loss(logits, labels, teacher_logits, T=2.0, a=0.25))
    ref = _reference(logits, labels, teacher_logits, T=2.0, a=0.25)
    assert jnp.allclose(loss, ref, atol=1e-5, rtol=1e-5), (loss, ref)

    # --- bf16 inputs + ragged N (exercises row masking / multi-tile grid) -
    B2, S2, C2 = 2, 9, 32          # N = 18, not a multiple of the tile
    logits_b = jax.random.normal(k1, (B2, S2, C2), dtype=jnp.float32).astype(jnp.bfloat16)
    teacher_b = jax.random.normal(k2, (B2, S2, C2), dtype=jnp.float32).astype(jnp.bfloat16)
    labels_b = jax.random.randint(k3, (B2, S2), 0, C2, dtype=jnp.int32)

    loss_b = jax.block_until_ready(
        distillation_loss(logits_b, labels_b, teacher_b, T=2.0, a=0.25, row_tile=8))
    ref_b = _reference(logits_b.astype(jnp.float32), labels_b,
                       teacher_b.astype(jnp.float32), T=2.0, a=0.25)
    assert jnp.allclose(loss_b, ref_b, atol=1e-4, rtol=1e-4), (loss_b, ref_b)

    print("KERNEL_OK")
</pallas_src>

<mosaic_0001>
module attributes {stable_mosaic.version = 11 : i64} {
  func.func @_distill_kernel(%arg0: i32, %arg1: i32, %arg2: memref<16x32xf32, #tpu.memory_space<vmem>>, %arg3: memref<16x1xi32, #tpu.memory_space<vmem>>, %arg4: memref<16x32xf32, #tpu.memory_space<vmem>>, %arg5: memref<8x128xf32, #tpu.memory_space<vmem>>, %arg6: memref<1x32xf32, #tpu.memory_space<vmem>>) attributes {dimension_semantics = [#tpu.dimension_semantics<parallel>, #tpu.dimension_semantics<arbitrary>], iteration_bounds = array<i64: 1, 1>, scalar_prefetch = 0 : i64, scratch_operands = 1 : i64, tpu.core_type = #tpu.core_type<tc>, window_params = [{transform_indices = @transform_0, window_bounds = array<i64: 16, 32>}, {transform_indices = @transform_1, window_bounds = array<i64: 16, 1>}, {transform_indices = @transform_2, window_bounds = array<i64: 16, 32>}, {transform_indices = @transform_3, window_bounds = array<i64: 8, 128>}]} {
    %c0_i32 = arith.constant 0 : i32
    %0 = arith.cmpi eq, %arg1, %c0_i32 : i32
    %1 = arith.extui %0 : i1 to i32
    %c0_i32_0 = arith.constant 0 : i32
    %2 = arith.cmpi ne, %1, %c0_i32_0 : i32
    scf.if %2 {
      %cst_25 = arith.constant 0.000000e+00 : f32
      %76 = vector.broadcast %cst_25 : f32 to vector<1x32xf32>
      %c0_26 = arith.constant 0 : index
      %c0_27 = arith.constant 0 : index
      %77 = vector.load %arg6[%c0_26, %c0_27] : memref<1x32xf32, #tpu.memory_space<vmem>>, vector<1x32xf32>
      tpu.vector_store %arg6[%c0_26, %c0_27], %76 {strides = array<i32>} : memref<1x32xf32, #tpu.memory_space<vmem>>, vector<1x32xf32>,
    } else {
    }
    %c1_i32 = arith.constant 1 : i32
    %3 = arith.muli %arg0, %c1_i32 : i32
    %4 = arith.addi %3, %arg1 : i32
    %c16_i32 = arith.constant 16 : i32
    %5 = arith.muli %4, %c16_i32 : i32
    %6 = tpu.iota {dimensions = array<i32: 0>} : vector<16x1xi32>
    %7 = vector.broadcast %5 : i32 to vector<16x1xi32>
    %8 = arith.addi %7, %6 : vector<16x1xi32>
    %c16_i32_1 = arith.constant 16 : i32
    %9 = vector.broadcast %c16_i32_1 : i32 to vector<16x1xi32>
    %10 = arith.cmpi slt, %8, %9 : vector<16x1xi32>
    %c0 = arith.constant 0 : index
    %c0_2 = arith.constant 0 : index
    %11 = vector.load %arg2[%c0, %c0_2] : memref<16x32xf32, #tpu.memory_space<vmem>>, vector<16x32xf32>
    %cst = arith.constant 0.000000e+00 : f32
    %12 = vector.shape_cast %10 : vector<16x1xi1> to vector<16x1xi1>
    %13 = vector.broadcast %12 : vector<16x1xi1> to vector<16x32xi1>
    %14 = vector.broadcast %cst : f32 to vector<16x32xf32>
    %15 = arith.select %13, %11, %14 : vector<16x32xi1>, vector<16x32xf32>
    %c0_3 = arith.constant 0 : index
    %c0_4 = arith.constant 0 : index
    %16 = vector.load %arg4[%c0_3, %c0_4] : memref<16x32xf32, #tpu.memory_space<vmem>>, vector<16x32xf32>
    %cst_5 = arith.constant 5.000000e-01 : f32
    %17 = vector.broadcast %cst_5 : f32 to vector<16x32xf32>
    %18 = arith.mulf %16, %17 : vector<16x32xf32>
    %cst_6 = arith.constant 0.000000e+00 : f32
    %19 = vector.shape_cast %10 : vector<16x1xi1> to vector<16x1xi1>
    %20 = vector.broadcast %19 : vector<16x1xi1> to vector<16x32xi1>
    %21 = vector.broadcast %cst_6 : f32 to vector<16x32xf32>
    %22 = arith.select %20, %18, %21 : vector<16x32xi1>, vector<16x32xf32>
    %c0_7 = arith.constant 0 : index
    %c0_8 = arith.constant 0 : index
    %23 = vector.load %arg3[%c0_7, %c0_8] : memref<16x1xi32, #tpu.memory_space<vmem>>, vector<16x1xi32>
    %cst_9 = arith.constant dense<0xFF800000> : vector<16xf32>
    %24 = vector.multi_reduction <maximumf>, %15, %cst_9 [1] : vector<16x32xf32> to vector<16xf32>
    %25 = vector.shape_cast %24 : vector<16xf32> to vector<16x1xf32>
    %26 = vector.broadcast %25 : vector<16x1xf32> to vector<16x32xf32>
    %27 = arith.subf %15, %26 : vector<16x32xf32>
    %28 = math.exp %27 : vector<16x32xf32>
    %cst_10 = arith.constant dense<0.000000e+00> : vector<16xf32>
    %29 = vector.multi_reduction <add>, %28, %cst_10 [1] : vector<16x32xf32> to vector<16xf32>
    %30 = vector.shape_cast %29 : vector<16xf32> to vector<16x1xf32>
    %31 = vector.broadcast %25 : vector<16x1xf32> to vector<16x32xf32>
    %32 = arith.subf %15, %31 : vector<16x32xf32>
    %33 = math.log %30 : vector<16x1xf32>
    %34 = vector.broadcast %33 : vector<16x1xf32> to vector<16x32xf32>
    %35 = arith.subf %32, %34 : vector<16x32xf32>
    %cst_11 = arith.constant dense<0xFF800000> : vector<16xf32>
    %36 = vector.multi_reduction <maximumf>, %22, %cst_11 [1] : vector<16x32xf32> to vector<16xf32>
    %37 = vector.shape_cast %36 : vector<16xf32> to vector<16x1xf32>
    %38 = vector.broadcast %37 : vector<16x1xf32> to vector<16x32xf32>
    %39 = arith.subf %22, %38 : vector<16x32xf32>
    %40 = math.exp %39 : vector<16x32xf32>
    %cst_12 = arith.constant dense<0.000000e+00> : vector<16xf32>
    %41 = vector.multi_reduction <add>, %40, %cst_12 [1] : vector<16x32xf32> to vector<16xf32>
    %42 = vector.shape_cast %41 : vector<16xf32> to vector<16x1xf32>
    %43 = vector.broadcast %37 : vector<16x1xf32> to vector<16x32xf32>
    %44 = arith.subf %22, %43 : vector<16x32xf32>
    %45 = math.log %42 : vector<16x1xf32>
    %46 = vector.broadcast %45 : vector<16x1xf32> to vector<16x32xf32>
    %47 = arith.subf %44, %46 : vector<16x32xf32>
    %cst_13 = arith.constant 1.000000e+00 : f32
    %48 = vector.broadcast %cst_13 : f32 to vector<16x1xf32>
    %49 = arith.divf %48, %42 : vector<16x1xf32>
    %50 = vector.broadcast %49 : vector<16x1xf32> to vector<16x32xf32>
    %51 = arith.mulf %40, %50 : vector<16x32xf32>
    %52 = tpu.iota {dimensions = array<i32: 1>} : vector<16x32xi32>
    %53 = vector.broadcast %23 : vector<16x1xi32> to vector<16x32xi32>
    %54 = arith.cmpi eq, %52, %53 : vector<16x32xi32>
    %cst_14 = arith.constant 0.000000e+00 : f32
    %55 = vector.broadcast %cst_14 : f32 to vector<16x32xf32>
    %56 = arith.select %54, %35, %55 : vector<16x32xi1>, vector<16x32xf32>
    %57 = arith.subf %47, %35 : vector<16x32xf32>
    %58 = arith.mulf %51, %57 : vector<16x32xf32>
    %cst_15 = arith.constant 3.750000e-01 : f32
    %59 = vector.broadcast %cst_15 : f32 to vector<16x32xf32>
    %60 = arith.mulf %59, %58 : vector<16x32xf32>
    %cst_16 = arith.constant 1.562500e-02 : f32
    %61 = vector.broadcast %cst_16 : f32 to vector<16x32xf32>
    %62 = arith.mulf %61, %56 : vector<16x32xf32>
    %63 = arith.subf %60, %62 : vector<16x32xf32>
    %cst_17 = arith.constant 0.000000e+00 : f32
    %64 = vector.shape_cast %10 : vector<16x1xi1> to vector<16x1xi1>
    %65 = vector.broadcast %64 : vector<16x1xi1> to vector<16x32xi1>
    %66 = vector.broadcast %cst_17 : f32 to vector<16x32xf32>
    %67 = arith.select %65, %63, %66 : vector<16x32xi1>, vector<16x32xf32>
    %c0_18 = arith.constant 0 : index
    %c0_19 = arith.constant 0 : index
    %68 = vector.load %arg6[%c0_18, %c0_19] : memref<1x32xf32, #tpu.memory_space<vmem>>, vector<1x32xf32>
    %cst_20 = arith.constant dense<0.000000e+00> : vector<32xf32>
    %69 = vector.multi_reduction <add>, %67, %cst_20 [0] : vector<16x32xf32> to vector<32xf32>
    %70 = vector.shape_cast %69 : vector<32xf32> to vector<1x32xf32>
    %71 = arith.addf %68, %70 : vector<1x32xf32>
    %c0_21 = arith.constant 0 : index
    %c0_22 = arith.constant 0 : index
    %72 = vector.load %arg6[%c0_21, %c0_22] : memref<1x32xf32, #tpu.memory_space<vmem>>, vector<1x32xf32>
    tpu.vector_store %arg6[%c0_21, %c0_22], %71 {strides = array<i32>} : memref<1x32xf32, #tpu.memory_space<vmem>>, vector<1x32xf32>,
    %c0_i32_23 = arith.constant 0 : i32
    %73 = arith.cmpi eq, %arg1, %c0_i32_23 : i32
    %74 = arith.extui %73 : i1 to i32
    %c0_i32_24 = arith.constant 0 : i32
    %75 = arith.cmpi ne, %74, %c0_i32_24 : i32
    scf.if %75 {
      %c0_25 = arith.constant 0 : index
      %c0_26 = arith.constant 0 : index
      %76 = vector.load %arg6[%c0_25, %c0_26] : memref<1x32xf32, #tpu.memory_space<vmem>>, vector<1x32xf32>
      %77 = vector.shape_cast %76 : vector<1x32xf32> to vector<1x1x32xf32>
      %cst_27 = arith.constant dense<0.000000e+00> : vector<1xf32>
      %78 = vector.multi_reduction <add>, %77, %cst_27 [1, 2] : vector<1x1x32xf32> to vector<1xf32>
      %79 = vector.shape_cast %78 : vector<1xf32> to vector<1x1x1xf32>
      %80 = vector.extract %79[0, 0, 0] : f32 from vector<1x1x1xf32>
      %cst_28 = arith.constant 0.000000e+00 : f32
      %81 = vector.broadcast %cst_28 : f32 to vector<8x128xf32>
      %82 = vector.broadcast %80 : f32 to vector<8x128xf32>
      %83 = arith.addf %81, %82 : vector<8x128xf32>
      %c0_29 = arith.constant 0 : index
      %c0_30 = arith.constant 0 : index
      %84 = vector.load %arg5[%c0_29, %c0_30] : memref<8x128xf32, #tpu.memory_space<vmem>>, vector<8x128xf32>
      tpu.vector_store %arg5[%c0_29, %c0_30], %83 {strides = array<i32>} : memref<8x128xf32, #tpu.memory_space<vmem>>, vector<8x128xf32>,
    } else {
    }
    return
  }
  func.func @transform_0(%arg0: i32, %arg1: i32) -> (i32, i32) {
    %c1_i32 = arith.constant 1 : i32
    %0 = arith.muli %arg0, %c1_i32 : i32
    %1 = arith.addi %0, %arg1 : i32
    %c0_i32 = arith.constant 0 : i32
    %2 = arith.minsi %1, %c0_i32 : i32
    %c0_i32_0 = arith.constant 0 : i32
    %c0_i32_1 = arith.constant 0 : i32
    return %2, %c0_i32_0 : i32, i32
  }
  func.func @transform_1(%arg0: i32, %arg1: i32) -> (i32, i32) {
    %c1_i32 = arith.constant 1 : i32
    %0 = arith.muli %arg0, %c1_i32 : i32
    %1 = arith.addi %0, %arg1 : i32
    %c0_i32 = arith.constant 0 : i32
    %2 = arith.minsi %1, %c0_i32 : i32
    %c0_i32_0 = arith.constant 0 : i32
    %c0_i32_1 = arith.constant 0 : i32
    return %2, %c0_i32_0 : i32, i32
  }
  func.func @transform_2(%arg0: i32, %arg1: i32) -> (i32, i32) {
    %c1_i32 = arith.constant 1 : i32
    %0 = arith.muli %arg0, %c1_i32 : i32
    %1 = arith.addi %0, %arg1 : i32
    %c0_i32 = arith.constant 0 : i32
    %2 = arith.minsi %1, %c0_i32 : i32
    %c0_i32_0 = arith.constant 0 : i32
    %c0_i32_1 = arith.constant 0 : i32
    return %2, %c0_i32_0 : i32, i32
  }
  func.func @transform_3(%arg0: i32, %arg1: i32) -> (i32, i32) {
    %c0_i32 = arith.constant 0 : i32
    %c0_i32_0 = arith.constant 0 : i32
    return %arg0, %c0_i32 : i32, i32
  }
}

</mosaic_0001>

<bundles_post_ra>
// kernel: tpu_custom_call.1
= control target key start
LH: loop header
LB: loop body
LE: loop exit
PB: predicated region body
PF: predicated region fallthrough
CT: control target
= control target key end

     0   :  { %8 = vsyncpa [#allocation4], 0  ;;  %s404_s0 = inlined_call_operand.vmem [shape: f32[16,32], index: 0, kind: input, shape index: {}]   ;;  %s405_s1 = inlined_call_operand.vmem [shape: s32[16,1], index: 1, kind: input, shape index: {}]   ;;  %s406_s2 = inlined_call_operand.hbm [shape: f32[16,32], index: 2, kind: input, shape index: {}]   ;;  %s407_s3 = inlined_call_operand.hbm [shape: f32[8,128], index: 3, kind: output, shape index: {}]  }
   0x1   :  { %9 = vsyncpa [#allocation5], 0  ;;  %s347_s12 = smov [#allocation3]  }
   0x2   :  { %s49_s13 = sshll.u32 %s347_s12, 4  ;;  %s50_s13 = int_to_ptr.vmem [resolvable:$true] %s49_s13 }
   0x3   :  { %s311_s14 = scalar_lea.vmem %s50_s13, 256  ;;  %p316_p1 = scmp.lt.s32.totalorder %s50_s13, %s50_s13 }
   0x4   :  { %p312_p0 = scmp.ne.s32.totalorder %s50_s13, %s311_s14  ;;  %p317_p2 = scmp.lt.s32.totalorder %s311_s14, %s311_s14 }
   0x6   :  { %p318_p3 = por %p317_p2, %p316_p1 }
   0x8   :  { %p319_p4 = pnand %p318_p3, %p312_p0 }
   0xa   :  { %322 = shalt.err (!%p319_p4)
}
   0xb   :  { %s348_s15 = smov 128   ;;  %s349_s16 = smov 8  }
   0xc   :  { %55 = dma.hbm_to_vmem [thread:$0]  %s406_s2, 256, %s50_s13, [#allocation4], %s348_s15, %s348_s15, %s349_s16  }
   0xd   :  { %343 = dma.done.wait [#allocation4], 256  }
   0xe   :  { %344 = vsyncadd [#allocation4], 4294967040  ;;  %vm135_vm0 = vcmask 261120   ;;  %v119_v0 = vld [vmem:[%s404_s0] sm:$0xff]  ;;  %v120_v2 = vld [vmem:[%s404_s0 + $0x8] sm:$0xff]  ;;  %v350_v10 = vmov 0   ;;  %v190_v39 = vlaneseq }
   0xf   :  { %v127_v1 = vld [vmem:[#allocation3] sm:$0xff]  ;;  %v136_v3 = vsel %vm135_vm0, %v119_v0, -inf  ;;  %v128_v5 = vld [vmem:[#allocation3 + $0x8] sm:$0xff]  ;;  %v139_v8 = vsel %vm135_vm0, %v120_v2, -inf  ;;  %281 = vset.pattern.permute.xlu0 %v350_v10  ;;  %282 = vset.pattern.permute.xlu1 %v350_v10  ;;  %vm107_vm1 = vcmask 253952   ;;  %v351_v33 = vmov 0.0  }
  0x10   :  { %v129_v4 = vmul.f32 0.5, %v127_v1  ;;  %137 = vmax.xlane.f32.xlu0 %v136_v3  ;;  %v130_v6 = vmul.f32 0.5, %v128_v5  ;;  %v134_v31 = vld [vmem:[%s405_s1 + $0x8] sm:$0xff]  ;;  %v133_v32 = vld [vmem:[%s405_s1] sm:$0xff]  ;;  %108 = vst.msk [vmem:[#allocation2] sm:$0x1] %vm107_vm1, %v351_v33 }
  0x11   :  { %v191_v43 = vand.u32 127, %v190_v39  ;;  %s352_s1 = smov [#allocation6]  }
  0x12   :  { %v160_v7 = vsel %vm135_vm0, %v129_v4, -inf  ;;  %v163_v9 = vsel %vm135_vm0, %v130_v6, -inf  ;;  %s250_s25 = sshll.u32 %s352_s1, 4  ;;  %s251_s25 = int_to_ptr.vmem [resolvable:$true] %s250_s25 }
  0x13   :  { %161 = vmax.xlane.f32.xlu1 %v160_v7  ;;  %s323_s27 = scalar_lea.vmem %s251_s25, 128  ;;  %p328_p6 = scmp.lt.s32.totalorder %s251_s25, %s251_s25 }
  0x14   :  { %140 = vmax.xlane.f32.xlu0 %v139_v8  ;;  %p324_p5 = scmp.ne.s32.totalorder %s251_s25, %s323_s27  ;;  %p329_p7 = scmp.lt.s32.totalorder %s323_s27, %s323_s27 }
  0x16   :  { %p330_p8 = por %p329_p7, %p328_p6 }
  0x17   :  { %164 = vmax.xlane.f32.xlu1 %v163_v9 }
  0x18   :  { %p331_p9 = pnand %p330_p8, %p324_p5 }
  0x99   :  { %v138_v11 = vpop.xlane.xlu0 %137 }
  0x9a   :  { %v142_v12 = vsub.f32 %v119_v0, %v138_v11 }
  0x9c   :  { %v162_v13 = vpop.xlane.xlu1 %161  ;;  %v144_v14 = vmul.f32 1.442695, %v142_v12 }
  0x9d   :  { %v166_v15 = vsub.f32 %v129_v4, %v162_v13  ;;  %v141_v16 = vpop.xlane.xlu0 %140 }
  0x9e   :  { %283 = vpow2.f32 %v144_v14  ;;  %v143_v18 = vsub.f32 %v120_v2, %v141_v16  ;;  %v214_v14 = vld [vmem:[#allocation2] sm:$0x1] }
  0x9f   :  { %v168_v17 = vmul.f32 1.442695, %v166_v15 }
  0xa0   :  { %v165_v19 = vpop.xlane.xlu1 %164  ;;  %v146_v20 = vmul.f32 1.442695, %v143_v18 }
  0xa1   :  { %285 = vpow2.f32 %v168_v17  ;;  %v167_v21 = vsub.f32 %v130_v6, %v165_v19 }
  0xa2   :  { %287 = vpow2.f32 %v146_v20 }
  0xa3   :  { %v170_v22 = vmul.f32 1.442695, %v167_v21 }
  0xa5   :  { %289 = vpow2.f32 %v170_v22 }
  0xab   :  { %v284_v23 = vpop.eup %283 }
  0xac   :  { %v148_v24 = vsel %vm135_vm0, %v284_v23, 0.0 }
  0xad   :  { %149 = vadd.xlane.f32.xlu0 %v148_v24 }
  0xae   :  { %v286_v25 = vpop.eup %285 }
  0xaf   :  { %v172_v26 = vsel %vm135_vm0, %v286_v25, 0.0  ;;  %v288_v27 = vpop.eup %287 }
  0xb0   :  { %v151_v28 = vsel %vm135_vm0, %v288_v27, 0.0 }
  0xb1   :  { %173 = vadd.xlane.f32.xlu0 %v172_v26  ;;  %152 = vadd.xlane.f32.xlu1 %v151_v28 }
  0xb2   :  { %v290_v29 = vpop.eup %289 }
  0xb3   :  { %v175_v30 = vsel %vm135_vm0, %v290_v29, 0.0 }
  0xb5   :  { %176 = vadd.xlane.f32.xlu1 %v175_v30 }
  0xc6   :  { %196 = vperm.xlu1 %282, %v134_v31  }
  0xc7   :  { %193 = vperm.xlu0 %281, %v133_v32  }
 0x136   :  { %v150_v34 = vpop.xlane.xlu0 %149 }
 0x137   :  { %291 = vlog2.f32 %v150_v34 }
 0x13a   :  { %v153_v35 = vpop.xlane.xlu1 %152  ;;  %v174_v36 = vpop.xlane.xlu0 %173 }
 0x13b   :  { %293 = vlog2.f32 %v153_v35 }
 0x13c   :  { %295 = vlog2.f32 %v174_v36 }
 0x13d   :  { %297 = vrcp.f32 %v174_v36 }
 0x13e   :  { %v177_v37 = vpop.xlane.xlu1 %176 }
 0x13f   :  { %299 = vlog2.f32 %v177_v37 }
 0x140   :  { %301 = vrcp.f32 %v177_v37 }
 0x142   :  { %v194_v46 = vpop.permute.xlu0 %193  ;;  %v197_v51 = vpop.permute.xlu1 %196 }
 0x143   :  { %vm198_vm2 = vcmp.eq.s32.totalorder %v191_v43, %v194_v46  ;;  %vm199_vm3 = vcmp.eq.s32.totalorder %v191_v43, %v197_v51 }
 0x144   :  { %v292_v38 = vpop.eup %291 }
 0x145   :  { %v155_v41 = vmul.f32 0.6931472, %v292_v38 }
 0x147   :  { %v158_v50 = vsub.f32 %v142_v12, %v155_v41 }
 0x148   :  { %v294_v40 = vpop.eup %293 }
 0x149   :  { %v296_v42 = vpop.eup %295  ;;  %v157_v44 = vmul.f32 0.6931472, %v294_v40  ;;  %v200_v59 = vsel %vm198_vm2, %v158_v50, 0.0 }
 0x14a   :  { %v179_v45 = vmul.f32 0.6931472, %v296_v42  ;;  %v298_v47 = vpop.eup %297  ;;  %v208_v0 = vmul.f32 0.015625, %v200_v59 }
 0x14b   :  { %v188_v54 = vmul.f32 %v298_v47, %v286_v25  ;;  %v159_v56 = vsub.f32 %v143_v18, %v157_v44 }
 0x14c   :  { %v300_v48 = vpop.eup %299  ;;  %v182_v49 = vsub.f32 %v166_v15, %v179_v45 }
 0x14d   :  { %v181_v52 = vmul.f32 0.6931472, %v300_v48  ;;  %v302_v53 = vpop.eup %301  ;;  %v201_v63 = vsel %vm199_vm3, %v159_v56, 0.0 }
 0x14e   :  { %v202_v55 = vsub.f32 %v182_v49, %v158_v50  ;;  %v189_v60 = vmul.f32 %v302_v53, %v290_v29  ;;  %v209_v4 = vmul.f32 0.015625, %v201_v63 }
 0x14f   :  { %v183_v57 = vsub.f32 %v167_v21, %v181_v52 }
 0x150   :  { %v204_v58 = vmul.f32 %v202_v55, %v188_v54 }
 0x151   :  { %v203_v61 = vsub.f32 %v183_v57, %v159_v56 }
 0x152   :  { %v206_v62 = vmul.f32 0.375, %v204_v58 }
 0x153   :  { %v205_v1 = vmul.f32 %v203_v61, %v189_v60 }
 0x154   :  { %v210_v2 = vsub.f32 %v206_v62, %v208_v0 }
 0x155   :  { %v207_v3 = vmul.f32 0.375, %v205_v1 }
 0x156   :  { %v215_v6 = vsel %vm135_vm0, %v210_v2, 0.0 }
 0x157   :  { %v211_v5 = vsub.f32 %v207_v3, %v209_v4 }
 0x159   :  { %v216_v7 = vsel %vm135_vm0, %v211_v5, 0.0 }
 0x15a   :  { %v217_v8 = vadd.f32 %v216_v7, %v215_v6 }
 0x15c   :  { %v218_v9 = vrot.slane %v217_v8, 4 }
 0x15e   :  { %v219_v10 = vadd.f32 %v218_v9, %v217_v8 }
 0x160   :  { %v220_v11 = vrot.slane %v219_v10, 2 }
 0x162   :  { %v221_v12 = vadd.f32 %v220_v11, %v219_v10 }
 0x164   :  { %v222_v13 = vrot.slane %v221_v12, 1 }
 0x166   :  { %v223_v15 = vadd.f32 %v222_v13, %v221_v12 }
 0x168   :  { %v224_v16 = vadd.f32 %v223_v15, %v214_v14 }
 0x16a   :  { %226 = vst.msk [vmem:[#allocation2] sm:$0x1] %vm107_vm1, %v224_v16 }
 0x171   :  { %v230_v17 = vld [vmem:[#allocation2] sm:$0x1] }
 0x172   :  { %v231_v18 = vsel %vm107_vm1, %v230_v17, 0.0 }
 0x173   :  { %232 = vadd.xlane.f32.xlu1 %v231_v18 }
 0x1fc   :  { %v233_v19 = vpop.xlane.xlu1 %232 }
 0x1fd   :  { %v234_v20 = vrot.slane %v233_v19, 4 }
 0x1ff   :  { %v235_v21 = vadd.f32 %v234_v20, %v233_v19 }
 0x201   :  { %v236_v22 = vrot.slane %v235_v21, 2 }
 0x203   :  { %v237_v23 = vadd.f32 %v236_v22, %v235_v21 }
 0x205   :  { %v238_v24 = vrot.slane %v237_v23, 1 }
 0x207   :  { %v239_v25 = vadd.f32 %v238_v24, %v237_v23 }
 0x209   :  { %273 = vpush %v239_v25 }
 0x23a   :  { %s274_s26 = spop %273 }
 0x23b   :  { %v241_v26 = vstv %s274_s26 }
 0x23c   :  { %243 = vst [vmem:[#allocation6] sm:$0xff] %v241_v26 }
 0x23d   :  { %334 = shalt.err (!%p331_p9)
}
 0x23e   :  { %253 = dma.vmem_to_hbm [thread:$0]  %s251_s25, 128, %s407_s3, [#allocation5]  }
 0x23f   :  { %345 = dma.done.wait [#allocation5], 128  }
 0x240   :  { %346 = vsyncadd [#allocation5], 4294967168 }
 0x241   :  { %257 = vsyncpa [#allocation4], 1 }
 0x242   :  { %258 = vsyncpa [#allocation5], 1 }

</bundles_post_ra>
